<compile_context>
chip_gen: v7x
topology: tpu7x:2x2x1
jax: 0.10.0
libtpu: 0.0.40
codegen_flags: <defaults>
</compile_context>

<pallas_src>
import jax
import jax.numpy as jnp
from jax.experimental import pallas as pl
from jax.experimental.pallas import tpu as pltpu

PATCH_SIZE = 3
EMB_SIZE = 64
_TM_MAX = 8192  # max patches per grid step (output block <= 2 MiB f32)


def _round_up(a, b):
    return ((a + b - 1) // b) * b


def _patch_embed_kernel(x_ref, w_ref, b_ref, o_ref):
    # x_ref: (TM2, P*K)    P patches packed per row
    # w_ref: (P*K, P*EMB)  block-diagonal replicated weight (resident)
    # b_ref: (1, P*EMB)    tiled bias (resident)
    # o_ref: (TM2, P*EMB)  lane-dense output (P*EMB == 128 for EMB == 64)
    acc = jnp.dot(x_ref[...], w_ref[...], preferred_element_type=jnp.float32)
    o_ref[...] = (acc + b_ref[...]).astype(o_ref.dtype)


def patch_embedding(x, weight_t, bias_2d, patch_size=PATCH_SIZE):
    """x: [B, C, H, W] (C must be 1). weight_t: [K, EMB] (PyTorch weight transposed),
    bias_2d: [1, EMB]. Returns [B, (H//p)*(W//p), EMB]."""
    B, C, H, W = x.shape
    assert C == 1, "reference nn.Linear(patch_size**2, emb) requires C == 1"
    assert H % patch_size == 0 and W % patch_size == 0

    h, w = H // patch_size, W // patch_size
    K = patch_size * patch_size * C
    EMB = weight_t.shape[1]
    assert weight_t.shape[0] == K

    # Pack P adjacent patches per matmul row so the output block is 128 lanes wide
    # (unmasked vector stores + dense output writeback). P == 2 for EMB == 64.
    P = 128 // EMB if (EMB <= 128 and 128 % EMB == 0) else 1

    # Rearrange 'b c (h ph) (w pw) -> b (h w) (ph pw c)'. Pure layout glue;
    # allow_input_fusion lets XLA fuse it into the pallas_call input DMA.
    xp = x.reshape(B, C, h, patch_size, w, patch_size)
    xp = jnp.transpose(xp, (0, 2, 4, 3, 5, 1))                 # b h w ph pw c
    x2d = xp.reshape(B * h * w, K)

    M = B * h * w
    # Adaptive tile: pick number of steps first so padding waste stays small,
    # then round the per-step patch count up to a multiple of 8*P.
    steps = max(1, -(-M // _TM_MAX))            # ceil(M / _TM_MAX)
    TM = _round_up(-(-M // steps), 8 * P)       # patches per grid step
    M_pad = steps * TM
    if M_pad != M:
        x2d = jnp.pad(x2d, ((0, M_pad - M), (0, 0)))

    TM2 = TM // P                               # packed rows per grid step
    x_packed = x2d.reshape(M_pad // P, P * K)   # row-major: [patch 2i | patch 2i+1]

    # Block-diagonal weight / tiled bias: one GEMM emits P patches per output row.
    w_packed = jnp.kron(jnp.eye(P, dtype=weight_t.dtype), weight_t)  # (P*K, P*EMB)
    b_packed = jnp.tile(bias_2d, (1, P))                             # (1, P*EMB)

    out_packed = pl.pallas_call(
        _patch_embed_kernel,
        out_shape=jax.ShapeDtypeStruct((M_pad // P, P * EMB), x.dtype),
        grid_spec=pltpu.PrefetchScalarGridSpec(
            num_scalar_prefetch=0,
            grid=(steps,),
            in_specs=[
                pl.BlockSpec((TM2, P * K), lambda i: (i, 0)),      # packed patch rows
                pl.BlockSpec((P * K, P * EMB), lambda i: (0, 0)),  # weight, resident
                pl.BlockSpec((1, P * EMB), lambda i: (0, 0)),      # bias, resident
            ],
            out_specs=pl.BlockSpec((TM2, P * EMB), lambda i: (i, 0)),
        ),
        compiler_params=pltpu.CompilerParams(
            dimension_semantics=("parallel",),
            allow_input_fusion=[True, False, False],
        ),
    )(x_packed, w_packed, b_packed)

    # (M_pad//P, P*EMB) is a pure row-major view of (M_pad, EMB): unpack + trim pad.
    out2d = out_packed.reshape(M_pad, EMB)[:M]
    return out2d.reshape(B, h * w, EMB)


if __name__ == "__main__":
    key = jax.random.PRNGKey(0)
    k_x, k_w, k_b = jax.random.split(key, 3)

    # Small shapes consistent with the module: B=2, C=1, H=W=12 (divisible by 3)
    B, C, H, W = 2, 1, 12, 12
    x = jax.random.normal(k_x, (B, C, H, W), dtype=jnp.float32)

    K = PATCH_SIZE * PATCH_SIZE  # in_features of the Linear
    # PyTorch Linear stores weight as [out, in]; we pass W.T and bias as (1, EMB)
    w_pt = jax.random.normal(k_w, (EMB_SIZE, K), dtype=jnp.float32) * 0.1
    b_pt = jax.random.normal(k_b, (EMB_SIZE,), dtype=jnp.float32) * 0.1

    fwd = jax.jit(patch_embedding)  # single XLA computation -> input fusion applies
    out = fwd(x, w_pt.T, b_pt.reshape(1, EMB_SIZE))
    out = jax.block_until_ready(out)

    # Reference check in plain JAX (same rearrange + linear, all f32)
    xp = x.reshape(B, C, H // PATCH_SIZE, PATCH_SIZE, W // PATCH_SIZE, PATCH_SIZE)
    xp = jnp.transpose(xp, (0, 2, 4, 3, 5, 1)).reshape(B, -1, K)
    ref = xp @ w_pt.T + b_pt
    assert out.shape == (B, (H // PATCH_SIZE) * (W // PATCH_SIZE), EMB_SIZE)
    assert jnp.allclose(out, ref, atol=1e-5, rtol=1e-5)

    print("KERNEL_OK")
</pallas_src>

<mosaic_0001>
module attributes {stable_mosaic.version = 11 : i64} {
  func.func @_patch_embed_kernel(%arg0: i32, %arg1: memref<16x18xf32, #tpu.memory_space<vmem>>, %arg2: memref<18x128xf32, #tpu.memory_space<vmem>>, %arg3: memref<1x128xf32, #tpu.memory_space<vmem>>, %arg4: memref<16x128xf32, #tpu.memory_space<vmem>>) attributes {dimension_semantics = [#tpu.dimension_semantics<parallel>], iteration_bounds = array<i64: 1>, scalar_prefetch = 0 : i64, scratch_operands = 0 : i64, tpu.core_type = #tpu.core_type<tc>, window_params = [{transform_indices = @transform_0, window_bounds = array<i64: 16, 18>}, {pipeline_mode = #tpu.pipeline_mode<synchronous>, transform_indices = @transform_1, window_bounds = array<i64: 18, 128>}, {pipeline_mode = #tpu.pipeline_mode<synchronous>, transform_indices = @transform_2, window_bounds = array<i64: 1, 128>}, {transform_indices = @transform_3, window_bounds = array<i64: 16, 128>}]} {
    %c0 = arith.constant 0 : index
    %c0_0 = arith.constant 0 : index
    %0 = vector.load %arg1[%c0, %c0_0] : memref<16x18xf32, #tpu.memory_space<vmem>>, vector<16x18xf32>
    %c0_1 = arith.constant 0 : index
    %c0_2 = arith.constant 0 : index
    %1 = vector.load %arg2[%c0_1, %c0_2] : memref<18x128xf32, #tpu.memory_space<vmem>>, vector<18x128xf32>
    %cst = arith.constant dense<0.000000e+00> : vector<16x128xf32>
    %2 = tpu.matmul %0, %1, %cst {dimension_numbers = #tpu.dot_dimension_numbers<[1], [0], [0], [1], [0, 0, 1, 1], [], []>} : vector<16x18xf32>, vector<18x128xf32>, vector<16x128xf32> -> vector<16x128xf32>
    %c0_3 = arith.constant 0 : index
    %c0_4 = arith.constant 0 : index
    %3 = vector.load %arg3[%c0_3, %c0_4] : memref<1x128xf32, #tpu.memory_space<vmem>>, vector<1x128xf32>
    %4 = vector.broadcast %3 : vector<1x128xf32> to vector<16x128xf32>
    %5 = arith.addf %2, %4 : vector<16x128xf32>
    %c0_5 = arith.constant 0 : index
    %c0_6 = arith.constant 0 : index
    %6 = vector.load %arg4[%c0_5, %c0_6] : memref<16x128xf32, #tpu.memory_space<vmem>>, vector<16x128xf32>
    tpu.vector_store %arg4[%c0_5, %c0_6], %5 {strides = array<i32>} : memref<16x128xf32, #tpu.memory_space<vmem>>, vector<16x128xf32>,
    return
  }
  func.func @transform_0(%arg0: i32) -> (i32, i32) {
    %c0_i32 = arith.constant 0 : i32
    %c0_i32_0 = arith.constant 0 : i32
    return %arg0, %c0_i32 : i32, i32
  }
  func.func @transform_1(%arg0: i32) -> (i32, i32) {
    %c0_i32 = arith.constant 0 : i32
    %c0_i32_0 = arith.constant 0 : i32
    %c0_i32_1 = arith.constant 0 : i32
    return %c0_i32, %c0_i32_0 : i32, i32
  }
  func.func @transform_2(%arg0: i32) -> (i32, i32) {
    %c0_i32 = arith.constant 0 : i32
    %c0_i32_0 = arith.constant 0 : i32
    %c0_i32_1 = arith.constant 0 : i32
    return %c0_i32, %c0_i32_0 : i32, i32
  }
  func.func @transform_3(%arg0: i32) -> (i32, i32) {
    %c0_i32 = arith.constant 0 : i32
    %c0_i32_0 = arith.constant 0 : i32
    return %arg0, %c0_i32 : i32, i32
  }
}

</mosaic_0001>

<bundles_post_ra>
// kernel: patch_embedding.1
= control target key start
LH: loop header
LB: loop body
LE: loop exit
PB: predicated region body
PF: predicated region fallthrough
CT: control target
= control target key end

     0   :  { %vm26_vm0 = vcmask 146432   ;;  %vm33_vm1 = vcmask 1041408   ;;  %s184_s1 = inlined_call_operand.vmem [shape: f32[18,128], index: 1, kind: input, shape index: {}]   ;;  %s185_s0 = inlined_call_operand.vmem [shape: f32[16,18], index: 0, kind: input, shape index: {}]   ;;  %s186_s2 = inlined_call_operand.vmem [shape: f32[1,128], index: 2, kind: input, shape index: {}]   ;;  %s187_s3 = inlined_call_operand.vmem [shape: f32[16,128], index: 3, kind: output, shape index: {}]  }
   0x1   :  { %v16_v0 = vld [vmem:[%s184_s1] sm:$0xff]  ;;  %v17_v1 = vld [vmem:[%s184_s1 + $0x8] sm:$0xff]  ;;  %v18_v4 = vld [vmem:[%s184_s1 + $0x10] sm:$0x3] }
   0x2   :  { %v136_v2 = vpack.c.bf16 %v17_v1, %v16_v0  ;;  %v14_v3 = vld [vmem:[%s185_s0] sm:$0xff]  ;;  %v15_v5 = vld [vmem:[%s185_s0 + $0x8] sm:$0xff] }
   0x3   :  { %133 = vmatprep.mubr.msk.f32.mxu0 %vm26_vm0, %v14_v3  ;;  %v118_v6 = vld [vmem:[%s186_s2] ss:$0 sm:$0xff] }
   0x4   :  { %137 = vmatprep.subr.bf16.mxu0 %v136_v2 }
   0x5   :  { %139 = vmatpush3.bf16.msra.mxu0 %v136_v2 }
   0x6   :  { %131 = vmatprep.subr.msk.mxu0 %vm33_vm1, %v18_v4 }
   0x9   :  { %132 = vmatpush3.msk.msra.mxu0 %vm33_vm1, %v18_v4 }
   0xa   :  { %134 = vmatmul.mubr.msk.f32.vlgmr.msra.gmra.mrb[0].mxu0 %vm26_vm0, %v15_v5 }
  0xdd   :  { %v135_v7 = vpop.f32.mrb[0].mxu0 }
  0xde   :  { %v109_v8 = vadd.f32 %v135_v7, %v118_v6  ;;  %v103_v9 = vpop.f32.mrb[1].mxu0 }
  0xdf   :  { %v104_v10 = vadd.f32 %v118_v6, %v103_v9 }
  0xe0   :  { %113 = vst [vmem:[%s187_s3 + $0x8] sm:$0xff] %v109_v8 }
  0xe1   :  { %112 = vst [vmem:[%s187_s3] sm:$0xff] %v104_v10 }

</bundles_post_ra>
